<compile_context>
chip_gen: v6e
topology: v6e:2x2x1
jax: 0.10.0
libtpu: 0.0.40
codegen_flags: <defaults>
</compile_context>

<pallas_src>
import functools

import jax
import jax.numpy as jnp
from jax.experimental import pallas as pl
from jax.experimental.pallas import tpu as pltpu


def _cdiv(a, b):
    return -(-a // b)


def _round_up(a, b):
    return _cdiv(a, b) * b


def _stats_kernel(x_ref, stats_ref, sum_ref, sumsq_ref, *, hw, hw_tile):
    """One grid step: accumulate sum / sum-of-squares over one HW chunk.

    x_ref:     (ROW_TILE, hw_tile) input block (any float dtype).
    stats_ref: (ROW_TILE, 2) output block; col 0 = mean, col 1 = unbiased var.
    sum_ref, sumsq_ref: (ROW_TILE, 1) f32 VMEM accumulators, resident across
                        the innermost ("arbitrary") HW-chunk axis.
    """
    k = pl.program_id(1)
    last = pl.num_programs(1) - 1

    @pl.when(k == 0)
    def _init():
        sum_ref[...] = jnp.zeros_like(sum_ref)
        sumsq_ref[...] = jnp.zeros_like(sumsq_ref)

    def _accumulate(mask_tail):
        x = x_ref[...].astype(jnp.float32)
        if mask_tail:
            lane = jax.lax.broadcasted_iota(jnp.int32, x.shape, dimension=1)
            x = jnp.where((k * hw_tile + lane) < hw, x, 0.0)
        # One-pass reduction: each vreg read once; accumulate sum and sum-sq.
        sum_ref[...] += jnp.sum(x, axis=-1, keepdims=True)
        sumsq_ref[...] += jnp.sum(x * x, axis=-1, keepdims=True)

    if hw % hw_tile != 0:
        # Only the final HW chunk is partial: keep the steady state mask-free
        # (no iota/compare/select on the hot path); mask only the tail chunk.
        @pl.when(k != last)
        def _full_chunk():
            _accumulate(mask_tail=False)

        @pl.when(k == last)
        def _tail_chunk():
            _accumulate(mask_tail=True)
    else:
        _accumulate(mask_tail=False)

    @pl.when(k == last)
    def _finalize():
        inv_hw = 1.0 / hw
        # HW == 1: torch.var(ddof=1) would give NaN; we emit 0 variance.
        inv_hw_m1 = 1.0 / (hw - 1) if hw > 1 else 0.0
        mean = sum_ref[...] * inv_hw
        var = (sumsq_ref[...] - hw * (mean * mean)) * inv_hw_m1
        var = jnp.maximum(var, 0.0)  # clamp tiny negatives from cancellation
        # Single packed store (mean | var) instead of two 1-lane partial stores.
        stats_ref[...] = jnp.concatenate([mean, var], axis=-1)


def _pick_tiles(nc, hw, dtype):
    """Pick (row_tile, hw_tile) from the VMEM budget and dtype packing."""
    itemsize = jnp.dtype(dtype).itemsize
    # Native sublane tile of the streamed dtype: 8 (f32), 16 (bf16), 32 (int8).
    sublane = max(8, 32 // itemsize)

    # Per-block byte budget: ~8 MiB on 64 MiB-VMEM parts (v7x), ~16 MiB on the
    # 128 MiB parts (v5e/v6e). Double-buffered input stays well inside VMEM.
    try:
        vmem_cap = int(pltpu.get_tpu_info().vmem_capacity_bytes)
    except Exception:  # conservative fallback: assume the smaller (v7x) VMEM
        vmem_cap = 64 * 1024 * 1024
    block_bytes_target = (16 if vmem_cap >= 96 * 1024 * 1024 else 8) * 1024 * 1024
    max_block_elems = block_bytes_target // itemsize

    if hw <= max_block_elems // sublane:
        hw_tile = hw                                            # whole row/block
    else:
        hw_tile = max(128, ((max_block_elems // sublane) // 128) * 128)

    row_tile = max(sublane, ((max_block_elems // hw_tile) // sublane) * sublane)
    # Keep >= 2 row-tiles whenever NC allows it so grid axis 0 has work to
    # split across TensorCores and the pipeline has blocks to overlap.
    if nc >= 2 * sublane:
        row_tile = min(row_tile, _round_up(_cdiv(nc, 2), sublane))
    row_tile = min(row_tile, _round_up(nc, sublane))
    return row_tile, hw_tile


def in_cal(x, *, _row_tile=None, _hw_tile=None):
    """Per-(N, C) spatial mean and unbiased variance; x returned unchanged.

    Args:
      x: (N, C, H, W) array (f32 or bf16; streamed in its native dtype).
      _row_tile, _hw_tile: optional tile-size overrides (testing only).
    Returns:
      (x, mean_in, var_in) with mean_in / var_in of shape (N, C), float32.
    """
    N, C, H, W = x.shape
    HW = H * W
    NC = N * C
    x_flat = x.reshape(NC, HW)

    row_tile, hw_tile = _pick_tiles(NC, HW, x.dtype)
    if _row_tile is not None:
        row_tile = _row_tile
    if _hw_tile is not None:
        hw_tile = _hw_tile

    grid = (pl.cdiv(NC, row_tile), pl.cdiv(HW, hw_tile))

    # VMEM request sized from the actual block (~3x covers the double-buffered
    # input) plus a small margin; leaves plenty of headroom on v7x's 64 MiB.
    block_bytes = row_tile * hw_tile * jnp.dtype(x.dtype).itemsize
    vmem_limit = int(max(3 * block_bytes + (2 << 20), 8 << 20))

    kernel = functools.partial(_stats_kernel, hw=HW, hw_tile=hw_tile)

    stats = pl.pallas_call(
        kernel,
        out_shape=jax.ShapeDtypeStruct((NC, 2), jnp.float32),
        grid=grid,
        in_specs=[pl.BlockSpec((row_tile, hw_tile), lambda i, k: (i, k))],
        out_specs=pl.BlockSpec((row_tile, 2), lambda i, k: (i, 0)),
        scratch_shapes=[
            pltpu.VMEM((row_tile, 1), jnp.float32),
            pltpu.VMEM((row_tile, 1), jnp.float32),
        ],
        compiler_params=pltpu.CompilerParams(
            # NOTE(v7x): pltpu.CORE_PARALLEL on axis 0 (or splitting the HW
            # axis across cores when only one row-tile exists) would shard the
            # work across both TensorCores; "parallel" kept for portability.
            dimension_semantics=("parallel", "arbitrary"),
            vmem_limit_bytes=vmem_limit,
        ),
    )(x_flat)

    mean_in = stats[:, 0].reshape(N, C)
    var_in = stats[:, 1].reshape(N, C)
    return x, mean_in, var_in


if __name__ == "__main__":
    key0, key1 = jax.random.split(jax.random.PRNGKey(0))

    def _check(x, **tile_overrides):
        out_x, mean_in, var_in = in_cal(x, **tile_overrides)
        jax.block_until_ready((out_x, mean_in, var_in))
        n, c = x.shape[0], x.shape[1]
        x_in = x.reshape(n, c, -1)
        ref_mean = jnp.mean(x_in, axis=-1)
        ref_var = jnp.var(x_in, axis=-1, ddof=1)  # torch unbiased variance
        assert jnp.allclose(out_x, x), "forward must return x unchanged"
        assert jnp.allclose(mean_in, ref_mean, atol=1e-5, rtol=1e-5)
        assert jnp.allclose(var_in, ref_var, atol=1e-5, rtol=1e-5)

    # Main small example consistent with the module (N, C, H, W).
    x = jax.random.normal(key0, (2, 4, 16, 16), dtype=jnp.float32)
    _check(x)

    # Also exercise the chunked-HW path (multi-step accumulation + masked tail
    # chunk) and multiple row-tiles via small tile overrides.
    x2 = jax.random.normal(key1, (2, 8, 10, 16), dtype=jnp.float32)
    _check(x2, _row_tile=8, _hw_tile=128)

    print("KERNEL_OK")
</pallas_src>

<mosaic_0001>
module attributes {stable_mosaic.version = 11 : i64} {
  func.func @_stats_kernel(%arg0: i32, %arg1: i32, %arg2: memref<8x256xf32, #tpu.memory_space<vmem>>, %arg3: memref<8x2xf32, #tpu.memory_space<vmem>>, %arg4: memref<8x1xf32, #tpu.memory_space<vmem>>, %arg5: memref<8x1xf32, #tpu.memory_space<vmem>>) attributes {dimension_semantics = [#tpu.dimension_semantics<parallel>, #tpu.dimension_semantics<arbitrary>], iteration_bounds = array<i64: 1, 1>, scalar_prefetch = 0 : i64, scratch_operands = 2 : i64, tpu.core_type = #tpu.core_type<tc>, window_params = [{transform_indices = @transform_0, window_bounds = array<i64: 8, 256>}, {transform_indices = @transform_1, window_bounds = array<i64: 8, 2>}]} {
    %c0_i32 = arith.constant 0 : i32
    %0 = arith.cmpi eq, %arg1, %c0_i32 : i32
    %1 = arith.extui %0 : i1 to i32
    %c0_i32_0 = arith.constant 0 : i32
    %2 = arith.cmpi ne, %1, %c0_i32_0 : i32
    scf.if %2 {
      %cst_13 = arith.constant 0.000000e+00 : f32
      %18 = vector.broadcast %cst_13 : f32 to vector<8x1xf32>
      %c0_14 = arith.constant 0 : index
      %c0_15 = arith.constant 0 : index
      %19 = vector.load %arg4[%c0_14, %c0_15] : memref<8x1xf32, #tpu.memory_space<vmem>>, vector<8x1xf32>
      tpu.vector_store %arg4[%c0_14, %c0_15], %18 {strides = array<i32>} : memref<8x1xf32, #tpu.memory_space<vmem>>, vector<8x1xf32>,
      %cst_16 = arith.constant 0.000000e+00 : f32
      %20 = vector.broadcast %cst_16 : f32 to vector<8x1xf32>
      %c0_17 = arith.constant 0 : index
      %c0_18 = arith.constant 0 : index
      %21 = vector.load %arg5[%c0_17, %c0_18] : memref<8x1xf32, #tpu.memory_space<vmem>>, vector<8x1xf32>
      tpu.vector_store %arg5[%c0_17, %c0_18], %20 {strides = array<i32>} : memref<8x1xf32, #tpu.memory_space<vmem>>, vector<8x1xf32>,
    } else {
    }
    %c0 = arith.constant 0 : index
    %c0_1 = arith.constant 0 : index
    %3 = vector.load %arg2[%c0, %c0_1] : memref<8x256xf32, #tpu.memory_space<vmem>>, vector<8x256xf32>
    %c0_2 = arith.constant 0 : index
    %c0_3 = arith.constant 0 : index
    %4 = vector.load %arg4[%c0_2, %c0_3] : memref<8x1xf32, #tpu.memory_space<vmem>>, vector<8x1xf32>
    %cst = arith.constant dense<0.000000e+00> : vector<8xf32>
    %5 = vector.multi_reduction <add>, %3, %cst [1] : vector<8x256xf32> to vector<8xf32>
    %6 = vector.shape_cast %5 : vector<8xf32> to vector<8x1xf32>
    %7 = arith.addf %4, %6 : vector<8x1xf32>
    %c0_4 = arith.constant 0 : index
    %c0_5 = arith.constant 0 : index
    %8 = vector.load %arg4[%c0_4, %c0_5] : memref<8x1xf32, #tpu.memory_space<vmem>>, vector<8x1xf32>
    tpu.vector_store %arg4[%c0_4, %c0_5], %7 {strides = array<i32>} : memref<8x1xf32, #tpu.memory_space<vmem>>, vector<8x1xf32>,
    %c0_6 = arith.constant 0 : index
    %c0_7 = arith.constant 0 : index
    %9 = vector.load %arg5[%c0_6, %c0_7] : memref<8x1xf32, #tpu.memory_space<vmem>>, vector<8x1xf32>
    %10 = arith.mulf %3, %3 : vector<8x256xf32>
    %cst_8 = arith.constant dense<0.000000e+00> : vector<8xf32>
    %11 = vector.multi_reduction <add>, %10, %cst_8 [1] : vector<8x256xf32> to vector<8xf32>
    %12 = vector.shape_cast %11 : vector<8xf32> to vector<8x1xf32>
    %13 = arith.addf %9, %12 : vector<8x1xf32>
    %c0_9 = arith.constant 0 : index
    %c0_10 = arith.constant 0 : index
    %14 = vector.load %arg5[%c0_9, %c0_10] : memref<8x1xf32, #tpu.memory_space<vmem>>, vector<8x1xf32>
    tpu.vector_store %arg5[%c0_9, %c0_10], %13 {strides = array<i32>} : memref<8x1xf32, #tpu.memory_space<vmem>>, vector<8x1xf32>,
    %c0_i32_11 = arith.constant 0 : i32
    %15 = arith.cmpi eq, %arg1, %c0_i32_11 : i32
    %16 = arith.extui %15 : i1 to i32
    %c0_i32_12 = arith.constant 0 : i32
    %17 = arith.cmpi ne, %16, %c0_i32_12 : i32
    scf.if %17 {
      %c0_13 = arith.constant 0 : index
      %c0_14 = arith.constant 0 : index
      %18 = vector.load %arg4[%c0_13, %c0_14] : memref<8x1xf32, #tpu.memory_space<vmem>>, vector<8x1xf32>
      %cst_15 = arith.constant 3.906250e-03 : f32
      %19 = vector.broadcast %cst_15 : f32 to vector<8x1xf32>
      %20 = arith.mulf %18, %19 : vector<8x1xf32>
      %c0_16 = arith.constant 0 : index
      %c0_17 = arith.constant 0 : index
      %21 = vector.load %arg5[%c0_16, %c0_17] : memref<8x1xf32, #tpu.memory_space<vmem>>, vector<8x1xf32>
      %22 = arith.mulf %20, %20 : vector<8x1xf32>
      %cst_18 = arith.constant 2.560000e+02 : f32
      %23 = vector.broadcast %cst_18 : f32 to vector<8x1xf32>
      %24 = arith.mulf %23, %22 : vector<8x1xf32>
      %25 = arith.subf %21, %24 : vector<8x1xf32>
      %cst_19 = arith.constant 0.00392156886 : f32
      %26 = vector.broadcast %cst_19 : f32 to vector<8x1xf32>
      %27 = arith.mulf %25, %26 : vector<8x1xf32>
      %cst_20 = arith.constant 0.000000e+00 : f32
      %28 = vector.broadcast %cst_20 : f32 to vector<8x1xf32>
      %29 = arith.maximumf %27, %28 : vector<8x1xf32>
      %30 = tpu.concatenate %20, %29 in 1 : vector<8x1xf32>, vector<8x1xf32> -> vector<8x2xf32>
      %c0_21 = arith.constant 0 : index
      %c0_22 = arith.constant 0 : index
      %31 = vector.load %arg3[%c0_21, %c0_22] : memref<8x2xf32, #tpu.memory_space<vmem>>, vector<8x2xf32>
      tpu.vector_store %arg3[%c0_21, %c0_22], %30 {strides = array<i32>} : memref<8x2xf32, #tpu.memory_space<vmem>>, vector<8x2xf32>,
    } else {
    }
    return
  }
  func.func @transform_0(%arg0: i32, %arg1: i32) -> (i32, i32) {
    %c0_i32 = arith.constant 0 : i32
    return %arg0, %arg1 : i32, i32
  }
  func.func @transform_1(%arg0: i32, %arg1: i32) -> (i32, i32) {
    %c0_i32 = arith.constant 0 : i32
    %c0_i32_0 = arith.constant 0 : i32
    return %arg0, %c0_i32 : i32, i32
  }
}

</mosaic_0001>

<bundles_post_ra>
// kernel: tpu_custom_call.1
= control target key start
LH: loop header
LB: loop body
LE: loop exit
PB: predicated region body
PF: predicated region fallthrough
CT: control target
= control target key end

     0   :  { %6 = vsyncpa [#allocation5], 0  ;;  %s92_s6 = smov [#allocation4]   ;;  %s116_s0 = inlined_call_operand.hbm [shape: f32[8,256], index: 0, kind: input, shape index: {}]   ;;  %s117_s1 = inlined_call_operand.vmem [shape: f32[8,2], index: 1, kind: output, shape index: {}]  }
   0x1   :  { %s13_s7 = sshll.u32 %s92_s6, 4  ;;  %s14_s7 = int_to_ptr.vmem [resolvable:$true] %s13_s7 }
   0x2   :  { %s78_s8 = scalar_lea.vmem %s14_s7, 256  ;;  %p83_p1 = scmp.lt.s32.totalorder %s14_s7, %s14_s7 }
   0x3   :  { %p79_p0 = scmp.ne.s32.totalorder %s14_s7, %s78_s8  ;;  %p84_p2 = scmp.lt.s32.totalorder %s78_s8, %s78_s8 }
   0x5   :  { %p85_p3 = por %p84_p2, %p83_p1 }
   0x7   :  { %p86_p4 = pnand %p85_p3, %p79_p0 }
   0x9   :  { %89 = shalt.err (!%p86_p4)
}
   0xa   :  { %16 = dma.hbm_to_vmem [thread:$0]  %s116_s0, 256, %s14_s7, [#allocation5]  }
   0xb   :  { %90 = dma.done.wait [#allocation5], 256  }
   0xc   :  { %91 = vsyncadd [#allocation5], 4294967040  ;;  %vm24_vm0 = vcmask 7168   ;;  %v93_v0 = vmov 0.0   ;;  %v27_v1 = vld [vmem:[#allocation4] sm:$0xff]  ;;  %v28_v2 = vld [vmem:[#allocation4 + $0x8] sm:$0xff] }
   0xd   :  { %25 = vst.msk [vmem:[#allocation2] sm:$0xff] %vm24_vm0, %v93_v0  ;;  %26 = vst.msk [vmem:[#allocation3] sm:$0xff] %vm24_vm0, %v93_v0  ;;  %v30_v3 = vadd.f32 %v28_v2, %v27_v1  ;;  %v37_v4 = vmul.f32 %v27_v1, %v27_v1  ;;  %v38_v5 = vmul.f32 %v28_v2, %v28_v2  ;;  %s94_s0 = smov 1   ;;  %vm60_vm1 = vcmask 15360  }
   0xf   :  { %31 = vadd.xlane.f32.xlu0 %v30_v3  ;;  %v39_v6 = vadd.f32 %v38_v5, %v37_v4 }
  0x13   :  { %40 = vadd.xlane.f32.xlu0 %v39_v6 }
  0x14   :  { %v29_v7 = vld [vmem:[#allocation2] sm:$0xff]  ;;  %v36_v10 = vld [vmem:[#allocation3] sm:$0xff] }
  0x98   :  { %v32_v8 = vpop.xlane.xlu0 %31 }
  0x99   :  { %v33_v9 = vadd.f32 %v32_v8, %v29_v7 }
  0x9b   :  { %35 = vst.msk [vmem:[#allocation2] sm:$0xff] %vm24_vm0, %v33_v9 }
  0x9c   :  { %v41_v11 = vpop.xlane.xlu0 %40 }
  0x9d   :  { %v42_v12 = vadd.f32 %v41_v11, %v36_v10 }
  0x9f   :  { %43 = vst.msk [vmem:[#allocation3] sm:$0xff] %vm24_vm0, %v42_v12 }
  0xa2   :  { %v47_v13 = vld [vmem:[#allocation2] sm:$0xff] }
  0xa3   :  { %v48_v14 = vmul.f32 0.00390625, %v47_v13 }
  0xa5   :  { %v50_v15 = vmul.f32 %v48_v14, %v48_v14 }
  0xa6   :  { %v49_v16 = vld [vmem:[#allocation3] sm:$0xff] }
  0xa7   :  { %v51_v17 = vmul.f32 256.0, %v50_v15 }
  0xa9   :  { %v52_v18 = vsub.f32 %v49_v16, %v51_v17 }
  0xab   :  { %v53_v19 = vmul.f32 0.003921569, %v52_v18 }
  0xad   :  { %v54_v20 = vmax.f32 %v53_v19, 0.0 }
  0xaf   :  { %56 = vrot.lane.b32.xlu1 %v54_v20, %s94_s0 }
 0x121   :  { %v57_v21 = vpop.permute.xlu1 %56 }
 0x122   :  { %v59_v22 = vsel %vm24_vm0, %v48_v14, %v57_v21 }
 0x123   :  { %61 = vst.msk [vmem:[%s117_s1] sm:$0xff] %vm60_vm1, %v59_v22 }
 0x124   :  { %66 = vsyncpa [#allocation5], 1 }

</bundles_post_ra>
